<compile_context>
chip_gen: v6e
topology: v6e:2x2x1
jax: 0.10.0
libtpu: 0.0.40
codegen_flags: <defaults>
</compile_context>

<pallas_src>
import functools

import numpy as np
import jax
import jax.numpy as jnp
from jax.experimental import pallas as pl
from jax.experimental.pallas import tpu as pltpu


_VMEM_LIMIT = 48 * 1024 * 1024  # safe on v5e/v6e (128 MiB) and v7x (64 MiB)


def _compiler_params():
    return pltpu.CompilerParams(dimension_semantics=("parallel",),
                                vmem_limit_bytes=_VMEM_LIMIT)


def _nb_for(n):
    """Images per grid step: fold 2 images into one matmul when possible while
    keeping at least 2 grid points (v7x megacore)."""
    return 2 if (n % 2 == 0 and n >= 4) else 1


# ----------------------------------------------------------------------------
# In-kernel helpers
# ----------------------------------------------------------------------------
def _apply_act(x, act):
    if act == "relu":
        return jnp.maximum(x, 0.0)
    if act == "sigmoid":
        return jax.nn.sigmoid(x)
    if act == "tanh":
        return jnp.tanh(x)
    if act == "softplus":  # torch.nn.Softplus (beta=1, threshold=20)
        return jnp.where(x > 20.0, x, jnp.log1p(jnp.exp(jnp.minimum(x, 20.0))))
    return x


def _apply_acts(x, acts):
    """acts: either a single activation name, or a tuple of (count, act)
    channel segments (used for the fused delta/weight head)."""
    if isinstance(acts, str):
        return _apply_act(x, acts)
    ch = jax.lax.broadcasted_iota(jnp.int32, x.shape, x.ndim - 1)
    out = x
    c0 = 0
    for cnt, act in acts:
        if act != "none":
            out = jnp.where((ch >= c0) & (ch < c0 + cnt), _apply_act(x, act), out)
        c0 += cnt
    return out


def _conv_matmul(x, w_ref, K, H, W):
    """Same-padded KxK conv as im2col matmul(s).

    x:     (nb, H+K-1, W+K-1, Cin) bf16 (already zero-padded)
    w_ref: (K*K*Cin, Cout) bf16  (tap-major, Cin-minor rows)
    returns f32 (nb*H*W, Cout)
    """
    nb, _, _, Cin = x.shape
    M = nb * H * W
    taps = [x[:, dy:dy + H, dx:dx + W, :].reshape(M, Cin)
            for dy in range(K) for dx in range(K)]
    if K == 1:
        return jnp.dot(taps[0], w_ref[...], preferred_element_type=jnp.float32)
    if Cin % 128 == 0:
        # lane-aligned im2col -> single full-depth MXU matmul
        col = jnp.concatenate(taps, axis=-1)          # (M, K*K*Cin)
        return jnp.dot(col, w_ref[...], preferred_element_type=jnp.float32)
    # non-lane-aligned Cin (e.g. 320): accumulate per tap
    acc = jnp.dot(taps[0], w_ref[0:Cin, :], preferred_element_type=jnp.float32)
    for t in range(1, K * K):
        acc = acc + jnp.dot(taps[t], w_ref[t * Cin:(t + 1) * Cin, :],
                            preferred_element_type=jnp.float32)
    return acc


# ----------------------------------------------------------------------------
# Pallas kernels
# ----------------------------------------------------------------------------
def _conv_kernel(x_ref, w_ref, b_ref, o_ref, *, K, H, W, acts):
    """Generic fused conv: im2col matmul + bias + activation(s)."""
    nb = o_ref.shape[0]
    Cout = o_ref.shape[-1]
    acc = _conv_matmul(x_ref[...], w_ref, K, H, W) + b_ref[...]
    acc = _apply_acts(acc, acts)
    o_ref[...] = acc.astype(o_ref.dtype).reshape(nb, H, W, Cout)


def _gru_zr_kernel(h_ref, x_ref, wh_ref, wx_ref, b_ref, z_ref, rh_ref, *, H, W):
    """Fused convz+convr (Cout=2*Ch) with the r*h epilogue.

    h_ref: (nb, H+2, W+2, Ch) bf16 padded hidden state
    x_ref: (nb, H+2, W+2, Cx) bf16 padded GRU input (inp|corr|flow)
    """
    nb = z_ref.shape[0]
    Ch = z_ref.shape[-1]
    M = nb * H * W
    h = h_ref[...]
    acc = _conv_matmul(h, wh_ref, 3, H, W)
    acc = acc + _conv_matmul(x_ref[...], wx_ref, 3, H, W)
    zr = jax.nn.sigmoid(acc + b_ref[...])                    # (M, 2*Ch) f32
    z = zr[:, :Ch]
    r = zr[:, Ch:]
    h_c = h[:, 1:1 + H, 1:1 + W, :].reshape(M, Ch).astype(jnp.float32)
    z_ref[...] = z.astype(z_ref.dtype).reshape(nb, H, W, Ch)
    rh_ref[...] = (r * h_c).astype(rh_ref.dtype).reshape(nb, H, W, Ch)


def _gru_q_kernel(rh_ref, x_ref, h_ref, z_ref, wh_ref, wx_ref, b_ref, o_ref,
                  *, H, W):
    """convq on [r*h, x] fused with the GRU mix h' = (1-z)*h + z*q."""
    nb = o_ref.shape[0]
    Ch = o_ref.shape[-1]
    M = nb * H * W
    acc = _conv_matmul(rh_ref[...], wh_ref, 3, H, W)
    acc = acc + _conv_matmul(x_ref[...], wx_ref, 3, H, W)
    q = jnp.tanh(acc + b_ref[...])                           # (M, Ch) f32
    z = z_ref[...].reshape(M, Ch).astype(jnp.float32)
    h = h_ref[...][:, 1:1 + H, 1:1 + W, :].reshape(M, Ch).astype(jnp.float32)
    o_ref[...] = ((1.0 - z) * h + z * q).reshape(nb, H, W, Ch)


# ----------------------------------------------------------------------------
# Pallas wrappers
# ----------------------------------------------------------------------------
def conv2d(x, p, acts, out_dtype=jnp.bfloat16):
    """x: (N, H, W, Cin); p: {'w': (K*K*Cin, Cout) bf16, 'b': (1, Cout) f32, 'K'}."""
    N, H, W, Cin = x.shape
    K = p["K"]
    Cout = p["w"].shape[-1]
    pad = (K - 1) // 2
    xb = x.astype(jnp.bfloat16)
    if pad:
        xb = jnp.pad(xb, ((0, 0), (pad, pad), (pad, pad), (0, 0)))
    Hp, Wp = H + 2 * pad, W + 2 * pad
    nb = _nb_for(N)
    kern = functools.partial(_conv_kernel, K=K, H=H, W=W, acts=acts)
    return pl.pallas_call(
        kern,
        out_shape=jax.ShapeDtypeStruct((N, H, W, Cout), out_dtype),
        grid=(N // nb,),
        in_specs=[
            pl.BlockSpec((nb, Hp, Wp, Cin), lambda i: (i, 0, 0, 0)),
            pl.BlockSpec((K * K * Cin, Cout), lambda i: (0, 0)),
            pl.BlockSpec((1, Cout), lambda i: (0, 0)),
        ],
        out_specs=pl.BlockSpec((nb, H, W, Cout), lambda i: (i, 0, 0, 0)),
        compiler_params=_compiler_params(),
    )(xb, p["w"], p["b"])


def conv_gru(pp, net_x, inp_cat):
    """net_x: (N,H,W,128) f32, inp_cat: (N,H,W,320) bf16 -> (N,H,W,128) f32."""
    N, H, W, Ch = net_x.shape
    Cx = inp_cat.shape[-1]
    nb = _nb_for(N)
    Hp, Wp = H + 2, W + 2
    h_pad = jnp.pad(net_x.astype(jnp.bfloat16), ((0, 0), (1, 1), (1, 1), (0, 0)))
    x_pad = jnp.pad(inp_cat.astype(jnp.bfloat16), ((0, 0), (1, 1), (1, 1), (0, 0)))
    grid = (N // nb,)
    cp = _compiler_params()

    z, rh = pl.pallas_call(
        functools.partial(_gru_zr_kernel, H=H, W=W),
        out_shape=(jax.ShapeDtypeStruct((N, H, W, Ch), jnp.bfloat16),
                   jax.ShapeDtypeStruct((N, H, W, Ch), jnp.bfloat16)),
        grid=grid,
        in_specs=[
            pl.BlockSpec((nb, Hp, Wp, Ch), lambda i: (i, 0, 0, 0)),
            pl.BlockSpec((nb, Hp, Wp, Cx), lambda i: (i, 0, 0, 0)),
            pl.BlockSpec((9 * Ch, 2 * Ch), lambda i: (0, 0)),
            pl.BlockSpec((9 * Cx, 2 * Ch), lambda i: (0, 0)),
            pl.BlockSpec((1, 2 * Ch), lambda i: (0, 0)),
        ],
        out_specs=(pl.BlockSpec((nb, H, W, Ch), lambda i: (i, 0, 0, 0)),
                   pl.BlockSpec((nb, H, W, Ch), lambda i: (i, 0, 0, 0))),
        compiler_params=cp,
    )(h_pad, x_pad, pp["zr_wh"], pp["zr_wx"], pp["zr_b"])

    rh_pad = jnp.pad(rh, ((0, 0), (1, 1), (1, 1), (0, 0)))
    net_new = pl.pallas_call(
        functools.partial(_gru_q_kernel, H=H, W=W),
        out_shape=jax.ShapeDtypeStruct((N, H, W, Ch), jnp.float32),
        grid=grid,
        in_specs=[
            pl.BlockSpec((nb, Hp, Wp, Ch), lambda i: (i, 0, 0, 0)),   # r*h (padded)
            pl.BlockSpec((nb, Hp, Wp, Cx), lambda i: (i, 0, 0, 0)),   # x (padded)
            pl.BlockSpec((nb, Hp, Wp, Ch), lambda i: (i, 0, 0, 0)),   # h (padded)
            pl.BlockSpec((nb, H, W, Ch), lambda i: (i, 0, 0, 0)),     # z
            pl.BlockSpec((9 * Ch, Ch), lambda i: (0, 0)),
            pl.BlockSpec((9 * Cx, Ch), lambda i: (0, 0)),
            pl.BlockSpec((1, Ch), lambda i: (0, 0)),
        ],
        out_specs=pl.BlockSpec((nb, H, W, Ch), lambda i: (i, 0, 0, 0)),
        compiler_params=cp,
    )(rh_pad, x_pad, h_pad, z, pp["q_wh"], pp["q_wx"], pp["q_b"])
    return net_new


# ----------------------------------------------------------------------------
# Parameters (deterministic synthetic init, matches nn.Module shapes)
# ----------------------------------------------------------------------------
def _conv_params(key, K, cin, cout):
    kw, kb = jax.random.split(key)
    fan_in = K * K * cin
    w = jax.random.normal(kw, (K * K, cin, cout), jnp.float32) / np.sqrt(fan_in)
    b = jax.random.normal(kb, (cout,), jnp.float32) * 0.01
    return {"w": w, "b": b, "K": K}


def init_params(key):
    ks = jax.random.split(key, 15)
    cor_planes = 4 * (2 * 3 + 1) ** 2  # 196
    p = {}
    # corr_encoder: Conv2d(196,128,1) ReLU, Conv2d(128,128,3) ReLU
    p["corr1"] = _conv_params(ks[0], 1, cor_planes, 128)
    p["corr2"] = _conv_params(ks[1], 3, 128, 128)
    # flow_encoder: Conv2d(4,128,7) ReLU, Conv2d(128,64,3) ReLU
    p["flow1"] = _conv_params(ks[2], 7, 4, 128)
    p["flow2"] = _conv_params(ks[3], 3, 128, 64)
    # ConvGRU(128, 128+128+64): three Conv2d(448,128,3)
    p["convz"] = _conv_params(ks[4], 3, 128 + 320, 128)
    p["convr"] = _conv_params(ks[5], 3, 128 + 320, 128)
    p["convq"] = _conv_params(ks[6], 3, 128 + 320, 128)
    # weight head: Conv2d(128,128,3) ReLU, Conv2d(128,2,3) Sigmoid
    p["w1"] = _conv_params(ks[7], 3, 128, 128)
    p["w2"] = _conv_params(ks[8], 3, 128, 2)
    # delta head: Conv2d(128,128,3) ReLU, Conv2d(128,2,3)
    p["d1"] = _conv_params(ks[9], 3, 128, 128)
    p["d2"] = _conv_params(ks[10], 3, 128, 2)
    # GraphAgg
    p["agg1"] = _conv_params(ks[11], 3, 128, 128)
    p["agg2"] = _conv_params(ks[12], 3, 128, 128)
    p["eta"] = _conv_params(ks[13], 3, 128, 1)
    p["upmask"] = _conv_params(ks[14], 1, 128, 8 * 8 * 9)
    return p


def _flat(w):  # (K*K, Cin, Cout) -> (K*K*Cin, Cout) bf16, tap-major rows
    KK, Cin, Cout = w.shape
    return w.reshape(KK * Cin, Cout).astype(jnp.bfloat16)


def _bias(b):
    return b.reshape(1, -1).astype(jnp.float32)


def prepare_params(p):
    """One-time weight preprocessing: bf16 cast, flatten, fuse convs."""
    pp = {}
    for name in ("corr1", "corr2", "flow2", "agg1", "agg2", "eta", "upmask"):
        pp[name] = {"w": _flat(p[name]["w"]), "b": _bias(p[name]["b"]),
                    "K": p[name]["K"]}
    # flow1 (7x7, Cin=4) is applied as a 1x1 conv on a wrapper-side im2col input
    pp["flow1"] = {"w": _flat(p["flow1"]["w"]), "b": _bias(p["flow1"]["b"]), "K": 1}
    # fused GRU gates: [convz | convr] along Cout; weights split at channel 128 (h|x)
    wzr = jnp.concatenate([p["convz"]["w"], p["convr"]["w"]], axis=-1)  # (9,448,256)
    pp["zr_wh"] = _flat(wzr[:, :128, :])
    pp["zr_wx"] = _flat(wzr[:, 128:, :])
    pp["zr_b"] = _bias(jnp.concatenate([p["convz"]["b"], p["convr"]["b"]]))
    wq = p["convq"]["w"]
    pp["q_wh"] = _flat(wq[:, :128, :])
    pp["q_wx"] = _flat(wq[:, 128:, :])
    pp["q_b"] = _bias(p["convq"]["b"])
    # fused delta/weight heads
    wdw1 = jnp.concatenate([p["d1"]["w"], p["w1"]["w"]], axis=-1)       # (9,128,256)
    pp["dw1"] = {"w": _flat(wdw1),
                 "b": _bias(jnp.concatenate([p["d1"]["b"], p["w1"]["b"]])),
                 "K": 3}
    # block-diagonal second stage: delta sees channels 0:128, weight sees 128:256
    wdw2 = jnp.zeros((9, 256, 4), jnp.float32)
    wdw2 = wdw2.at[:, :128, 0:2].set(p["d2"]["w"])
    wdw2 = wdw2.at[:, 128:, 2:4].set(p["w2"]["w"])
    pp["dw2"] = {"w": _flat(wdw2),
                 "b": _bias(jnp.concatenate([p["d2"]["b"], p["w2"]["b"]])),
                 "K": 3}
    return pp


# ----------------------------------------------------------------------------
# Module forward (glue around the Pallas kernels)
# ----------------------------------------------------------------------------
def graph_agg(pp, net_nhwc, ii, batch, num, H, W):
    """net_nhwc: (batch*num, H, W, 128); ii: (num,) host-visible int array."""
    net = conv2d(net_nhwc, pp["agg1"], "relu")                 # (B*N,H,W,128) bf16

    # torch.unique(return_inverse) + scatter_mean: tiny data-dependent segment
    # reduction over the `num` axis -> plain JAX glue (one-hot einsum).
    ii_np = np.asarray(ii)
    uniq, ix = np.unique(ii_np, return_inverse=True)
    G = int(uniq.shape[0])
    onehot = jnp.asarray(np.eye(G, dtype=np.float32)[ix])      # (num, G)
    counts = onehot.sum(axis=0)                                # (G,) >= 1
    net5 = net.astype(jnp.float32).reshape(batch, num, H, W, 128)
    summed = jnp.einsum("ng,bnhwc->bghwc", onehot, net5)
    mean = summed / counts[None, :, None, None, None]
    netg = mean.reshape(batch * G, H, W, 128)

    netg = conv2d(netg, pp["agg2"], "relu")
    eta = conv2d(netg, pp["eta"], "softplus", out_dtype=jnp.float32)    # (B*G,H,W,1)
    upmask = conv2d(netg, pp["upmask"], "none", out_dtype=jnp.float32)  # (B*G,H,W,576)

    eta = 0.01 * eta.reshape(batch, G, H, W)
    upmask = upmask.reshape(batch, G, H, W, 8 * 8 * 9).transpose(0, 1, 4, 2, 3)
    return eta, upmask


def update_module_forward(pp, net, inp, corr, flow=None, ii=None):
    """net/inp: (B,N,128,H,W), corr: (B,N,196,H,W), flow: (B,N,4,H,W) or None."""
    batch, num, ch, ht, wd = net.shape
    if flow is None:
        flow = jnp.zeros((batch, num, 4, ht, wd), jnp.float32)

    def to_nhwc(x):
        b, n, c, h, w = x.shape
        return x.reshape(b * n, c, h, w).transpose(0, 2, 3, 1)

    net_x = to_nhwc(net)
    inp_x = to_nhwc(inp).astype(jnp.bfloat16)
    corr_x = to_nhwc(corr)
    flow_x = to_nhwc(flow)

    # corr encoder: 1x1 relu -> 3x3 relu
    corr_x = conv2d(corr_x, pp["corr1"], "relu")
    corr_x = conv2d(corr_x, pp["corr2"], "relu")

    # flow encoder: 7x7 relu via wrapper im2col (one K=196 matmul) -> 3x3 relu
    fp = jnp.pad(flow_x.astype(jnp.bfloat16), ((0, 0), (3, 3), (3, 3), (0, 0)))
    fcols = jnp.concatenate(
        [fp[:, dy:dy + ht, dx:dx + wd, :] for dy in range(7) for dx in range(7)],
        axis=-1)                                               # (BN,H,W,196)
    flow_x = conv2d(fcols, pp["flow1"], "relu")
    flow_x = conv2d(flow_x, pp["flow2"], "relu")

    # ConvGRU: fused convz+convr (+ r*h epilogue) and convq (+ GRU mix epilogue)
    inp_cat = jnp.concatenate([inp_x, corr_x, flow_x], axis=-1)  # (BN,H,W,320) bf16
    net_x = conv_gru(pp, net_x, inp_cat)                         # (BN,H,W,128) f32

    # fused delta/weight heads (GradientClip is identity in forward)
    hid = conv2d(net_x, pp["dw1"], "relu")                       # (BN,H,W,256)
    dw = conv2d(hid, pp["dw2"], ((2, "none"), (2, "sigmoid")),
                out_dtype=jnp.float32)                           # (BN,H,W,4)
    # permute(0,1,3,4,2)[..., :2] of NCHW == our native NHWC layout
    delta = dw[..., 0:2].reshape(batch, num, ht, wd, 2)
    weight = dw[..., 2:4].reshape(batch, num, ht, wd, 2)

    net_out = net_x.transpose(0, 3, 1, 2).reshape(batch, num, ch, ht, wd)

    if ii is not None:
        eta, upmask = graph_agg(pp, net_x, ii, batch, num, ht, wd)
        return net_out, delta, weight, eta, upmask
    return net_out, delta, weight


# ----------------------------------------------------------------------------
if __name__ == "__main__":
    key = jax.random.PRNGKey(0)
    kp, k1, k2, k3, k4 = jax.random.split(key, 5)
    pp = prepare_params(init_params(kp))

    batch, num, ht, wd = 1, 4, 16, 16
    cor_planes = 4 * (2 * 3 + 1) ** 2  # 196
    net = jax.random.normal(k1, (batch, num, 128, ht, wd), jnp.float32) * 0.5
    inp = jax.random.normal(k2, (batch, num, 128, ht, wd), jnp.float32) * 0.5
    corr = jax.random.normal(k3, (batch, num, cor_planes, ht, wd), jnp.float32) * 0.5
    flow = jax.random.normal(k4, (batch, num, 4, ht, wd), jnp.float32) * 0.1
    ii = np.array([0, 0, 1, 1], dtype=np.int32)  # two unique frame indices

    outs = update_module_forward(pp, net, inp, corr, flow=flow, ii=ii)
    outs = jax.block_until_ready(outs)
    net_o, delta, weight, eta, upmask = outs

    G = 2
    assert net_o.shape == (batch, num, 128, ht, wd)
    assert delta.shape == (batch, num, ht, wd, 2)
    assert weight.shape == (batch, num, ht, wd, 2)
    assert eta.shape == (batch, G, ht, wd)
    assert upmask.shape == (batch, G, 8 * 8 * 9, ht, wd)
    assert all(bool(jnp.all(jnp.isfinite(o))) for o in
               (net_o, delta, weight, eta, upmask))
    assert bool(jnp.all(eta >= 0.0))                          # softplus * 0.01 >= 0
    assert bool(jnp.all((weight >= 0.0) & (weight <= 1.0)))   # sigmoid range

    print("KERNEL_OK")
</pallas_src>

<mosaic_0001>
module attributes {stable_mosaic.version = 11 : i64} {
  func.func @_conv_kernel(%arg0: i32, %arg1: memref<2x16x16x196xbf16, #tpu.memory_space<vmem>>, %arg2: memref<196x128xbf16, #tpu.memory_space<vmem>>, %arg3: memref<1x128xf32, #tpu.memory_space<vmem>>, %arg4: memref<2x16x16x128xbf16, #tpu.memory_space<vmem>>) attributes {dimension_semantics = [#tpu.dimension_semantics<parallel>], iteration_bounds = array<i64: 2>, scalar_prefetch = 0 : i64, scratch_operands = 0 : i64, tpu.core_type = #tpu.core_type<tc>, window_params = [{transform_indices = @transform_0, window_bounds = array<i64: 2, 16, 16, 196>}, {pipeline_mode = #tpu.pipeline_mode<synchronous>, transform_indices = @transform_1, window_bounds = array<i64: 196, 128>}, {pipeline_mode = #tpu.pipeline_mode<synchronous>, transform_indices = @transform_2, window_bounds = array<i64: 1, 128>}, {transform_indices = @transform_3, window_bounds = array<i64: 2, 16, 16, 128>}]} {
    %c0 = arith.constant 0 : index
    %c0_0 = arith.constant 0 : index
    %c0_1 = arith.constant 0 : index
    %c0_2 = arith.constant 0 : index
    %0 = vector.load %arg1[%c0, %c0_0, %c0_1, %c0_2] : memref<2x16x16x196xbf16, #tpu.memory_space<vmem>>, vector<2x16x16x196xbf16>
    %1 = vector.shape_cast %0 : vector<2x16x16x196xbf16> to vector<512x196xbf16>
    %c0_3 = arith.constant 0 : index
    %c0_4 = arith.constant 0 : index
    %2 = vector.load %arg2[%c0_3, %c0_4] : memref<196x128xbf16, #tpu.memory_space<vmem>>, vector<196x128xbf16>
    %cst = arith.constant dense<0.000000e+00> : vector<512x128xf32>
    %3 = tpu.matmul %1, %2, %cst {dimension_numbers = #tpu.dot_dimension_numbers<[1], [0], [0], [1], [0, 0, 1, 1], [], []>} : vector<512x196xbf16>, vector<196x128xbf16>, vector<512x128xf32> -> vector<512x128xf32>
    %c0_5 = arith.constant 0 : index
    %c0_6 = arith.constant 0 : index
    %4 = vector.load %arg3[%c0_5, %c0_6] : memref<1x128xf32, #tpu.memory_space<vmem>>, vector<1x128xf32>
    %5 = vector.broadcast %4 : vector<1x128xf32> to vector<512x128xf32>
    %6 = arith.addf %3, %5 : vector<512x128xf32>
    %cst_7 = arith.constant 0.000000e+00 : f32
    %7 = vector.broadcast %cst_7 : f32 to vector<512x128xf32>
    %8 = arith.maximumf %6, %7 : vector<512x128xf32>
    %9 = arith.truncf %8 : vector<512x128xf32> to vector<512x128xbf16>
    %10 = vector.shape_cast %9 : vector<512x128xbf16> to vector<2x16x16x128xbf16>
    %c0_8 = arith.constant 0 : index
    %c0_9 = arith.constant 0 : index
    %c0_10 = arith.constant 0 : index
    %c0_11 = arith.constant 0 : index
    %11 = vector.load %arg4[%c0_8, %c0_9, %c0_10, %c0_11] : memref<2x16x16x128xbf16, #tpu.memory_space<vmem>>, vector<2x16x16x128xbf16>
    tpu.vector_store %arg4[%c0_8, %c0_9, %c0_10, %c0_11], %10 {strides = array<i32>} : memref<2x16x16x128xbf16, #tpu.memory_space<vmem>>, vector<2x16x16x128xbf16>,
    return
  }
  func.func @transform_0(%arg0: i32) -> (i32, i32, i32, i32) {
    %c0_i32 = arith.constant 0 : i32
    %c0_i32_0 = arith.constant 0 : i32
    %c0_i32_1 = arith.constant 0 : i32
    %c0_i32_2 = arith.constant 0 : i32
    return %arg0, %c0_i32, %c0_i32_0, %c0_i32_1 : i32, i32, i32, i32
  }
  func.func @transform_1(%arg0: i32) -> (i32, i32) {
    %c0_i32 = arith.constant 0 : i32
    %c0_i32_0 = arith.constant 0 : i32
    %c0_i32_1 = arith.constant 0 : i32
    return %c0_i32, %c0_i32_0 : i32, i32
  }
  func.func @transform_2(%arg0: i32) -> (i32, i32) {
    %c0_i32 = arith.constant 0 : i32
    %c0_i32_0 = arith.constant 0 : i32
    %c0_i32_1 = arith.constant 0 : i32
    return %c0_i32, %c0_i32_0 : i32, i32
  }
  func.func @transform_3(%arg0: i32) -> (i32, i32, i32, i32) {
    %c0_i32 = arith.constant 0 : i32
    %c0_i32_0 = arith.constant 0 : i32
    %c0_i32_1 = arith.constant 0 : i32
    %c0_i32_2 = arith.constant 0 : i32
    return %arg0, %c0_i32, %c0_i32_0, %c0_i32_1 : i32, i32, i32, i32
  }
}

</mosaic_0001>

<bundles_post_ra>
// kernel: tpu_custom_call.1
= control target key start
LH: loop header
LB: loop body
LE: loop exit
PB: predicated region body
PF: predicated region fallthrough
CT: control target
= control target key end

     0   :  { %8 = vsyncpa [#allocation3], 0  ;;  %s2749_s0 = inlined_call_operand.hbm [shape: bf16[4,16,16,196], index: 0, kind: input, shape index: {}]   ;;  %s2750_s1 = inlined_call_operand.hbm [shape: bf16[196,128], index: 1, kind: input, shape index: {}]   ;;  %s2751_s2 = inlined_call_operand.vmem [shape: f32[1,128], index: 2, kind: input, shape index: {}]   ;;  %s2752_s3 = inlined_call_operand.hbm [shape: bf16[4,16,16,128], index: 3, kind: output, shape index: {}]  }
   0x1   :  { %10 = vsyncpa [#allocation3 + $0x1], 0 }
   0x2   :  { %11 = vsyncpa [#allocation6], 0 }
   0x3   :  { %12 = vsyncpa [#allocation4], 0 }
   0x4   :  { %14 = vsyncpa [#allocation4 + $0x1], 0  ;;  %s2343_s12 = smov 0   ;;  %s2345_s13 = smov 0  }
   0x5   :  { %s2347_s14 = smov 0   ;;  %s2349_s15 = smov 0  }
   0x6 LB: > { %s2364_s16 = sadd.s32 4294967295, %s2311_s15   ;;  %s1539_s17 = sadd.s32 4294967294, %s2311_s15   ;;  %s2311_s15 = sphi %s2349_s15, %s2774_s15   ;;  %s2307_s14 = sphi %s2347_s14, %s2773_s14   ;;  %s2303_s13 = sphi %s2345_s13, %s2772_s13   ;;  %s2299_s12 = sphi %s2343_s12, %s2771_s12  }
   0x7   : > { %p40_p0 = scmp.ne.s32.totalorder %s2303_s13, %s2299_s12  ;;  %p2753_p1 = scmp.eq.s32.totalorder %s2364_s16, 0 }
   0x8   : > { %p112_p3 = scmp.eq.s32.totalorder %s1539_s17, 1  ;;  %p1540_p5 = scmp.ge.s32.totalorder %s2311_s15, 1 }
   0x9   : > { %p2373_p4 = por %p2753_p1, %p40_p0  ;;  %p119_p7 = scmp.lt.s32.totalorder %s2311_s15, 3 }
   0xa   : > { %p2378_p6 = por %p112_p3, %p40_p0  ;;  %s2313_s21 = smov [#allocation5]  }
   0xb   : > { %s2757_s18 = scalar_select %p2373_p4, 1, 0 }
   0xc   : > { %s2758_s19 = scalar_select %p2378_p6, 1, 0 }
   0xd   : > { %p2383_p8 = pnand %p1540_p5, %p119_p7  ;;  %s131_s22 = sshll.u32 %s2313_s21, 4  ;;  %s132_s22 = int_to_ptr.vmem [resolvable:$true] %s131_s22 }
   0xe   : > { %s2397_s24 = sadd.s32 1, %s2311_s15   ;;  %s27_s25 = sadd.s32 1, %s2307_s14 }
   0xf   : > { %s2759_s20 = scalar_select %p2383_p8, 1, 0 }
  0x10   : > { %p2024_p9 = pneg %p2383_p8  ;;  %s24_s26 = ssub.s32 %s2311_s15, %s2397_s24 }
  0x11   : > { %s2200_s27 = scalar_lea.vmem %s132_s22, 1600  ;;  %p2208_p5 = scmp.lt.s32.totalorder %s132_s22, %s132_s22 }
  0x12   : > { %p2392_p11 = pnand %p2024_p9, %p2753_p1  ;;  %p2201_p13 = scmp.ne.s32.totalorder %s132_s22, %s2200_s27 }
  0x13   : > { %p2209_p7 = scmp.lt.s32.totalorder %s2200_s27, %s2200_s27 }
  0x14   : > { %p2191_p12 = pneg %p2392_p11 }
  0x15   : > { %p2210_p10 = por %p2209_p7, %p2208_p5 }
  0x16   : > { %p2203_p0 = pnand %p2201_p13, %p2191_p12 }
  0x18   : > { %p2204_p3 = pneg %p2203_p0 }
  0x1a   : > { %p2211_p2 = pnand %p2210_p10, %p2204_p3 }
  0x1c   : > { %2214 = shalt.err (!%p2211_p2)
}
  0x1d   : > { %s2314_s28 = smov 64   ;;  %s2315_s29 = smov 4  }
  0x1e   : > { %2027 = dma.hbm_to_vmem [thread:$0]  (!%p2392_p11), %s2750_s1, 1600, %s132_s22, [#allocation6], %s2314_s28, %s2314_s28, %s2315_s29  }
  0x1f   : > { %p25_p9 = scmp.eq.s32.totalorder %s24_s26, 0  ;;  %p34_p12 = scmp.ne.s32.totalorder %s2307_s14, %s2303_s13 }
  0x20   : > { %p35_p10 = scmp.eq.s32.totalorder %s2311_s15, 0  ;;  %p2037_p2 = scmp.lt.s32.totalorder %s2311_s15, 2 }
  0x21   : > { %s2414_s5 = scalar_select %p25_p9, %s2307_s14, %s27_s25  }
  0x22   : > { %p36_p13 = por %p35_p10, %p34_p12  ;;  %p2761_p0 = scmp.eq.s32.totalorder %s2364_s16, 1 }
  0x23   : > { %s148_s7 = sand.u32 1, %s2307_s14   ;;  %s1732_s8 = sshll.u32 %s2311_s15, 13 }
  0x24   : > { %p2418_p3 = por %p2761_p0, %p34_p12  ;;  %s1543_s9 = sshll.u32 %s148_s7, 9 }
  0x25   : > { %s2427_s17 = scalar_lea.hbm %s2749_s0, %s1732_s8  ;;  %s152_s21 = scalar_lea.vmem [#allocation2], %s1543_s9 }
  0x26   : > { %s2762_s6 = scalar_select %p2418_p3, 1, 0 }
  0x27   : > { %s160_s22 = sshll.u32 %s152_s21, 4  ;;  %p2429_p11 = pnand %p2037_p2, %p36_p13  ;;  %s2433_s22 = int_to_ptr.vmem [resolvable:$true] %s160_s22 }
  0x28   : > { %s2435_s25 = scalar_lea.sflag [#allocation3], %s148_s7  ;;  %s2215_s26 = scalar_lea.hbm %s2427_s17, 8192 }
  0x29   : > { %p2216_p5 = scmp.ne.s32.totalorder %s2427_s17, %s2215_s26  ;;  %p2217_p7 = pneg %p2429_p11 }
  0x2a   : > { %s2220_s29 = scalar_lea.hbm %s2749_s0, 16384  ;;  %p2221_p10 = scmp.lt.s32.totalorder %s2427_s17, %s2749_s0 }
  0x2b   : > { %p2218_p9 = pnand %p2217_p7, %p2216_p5  ;;  %p2222_p2 = scmp.lt.s32.totalorder %s2220_s29, %s2215_s26 }
  0x2d   : > { %p2219_p12 = pneg %p2218_p9  ;;  %p2223_p13 = por %p2222_p2, %p2221_p10 }
  0x2f   : > { %p2224_p0 = pnand %p2223_p13, %p2219_p12 }
  0x31   : > { %2227 = shalt.err (!%p2224_p0)
}
  0x32   : > { %s2228_s7 = scalar_lea.vmem %s2433_s22, 8192  ;;  %s2316_s8 = smov [#allocation2]  }
  0x33   : > { %p2229_p1 = scmp.ne.s32.totalorder %s2433_s22, %s2228_s7  ;;  %s2233_s9 = sshll.u32 %s2316_s8, 4  ;;  %s2234_s9 = int_to_ptr.vmem [resolvable:$false] %s2233_s9 }
  0x34   : > { %s2235_s10 = scalar_lea.vmem %s2234_s9, 16384  ;;  %p2236_p9 = scmp.lt.s32.totalorder %s2433_s22, %s2234_s9 }
  0x35   : > { %p2231_p6 = pnand %p2229_p1, %p2217_p7  ;;  %p2237_p3 = scmp.lt.s32.totalorder %s2235_s10, %s2228_s7 }
  0x37   : > { %p2232_p5 = pneg %p2231_p6  ;;  %p2238_p4 = por %p2237_p3, %p2236_p9 }
  0x39   : > { %p2239_p8 = pnand %p2238_p4, %p2232_p5 }
  0x3b   : > { %2242 = shalt.err (!%p2239_p8)
}
  0x3c   : > { %s2317_s11 = smov 128   ;;  %s2318_s21 = smov 8  }
  0x3d   : > { %2031 = dma.hbm_to_vmem [thread:$0]  (!%p2429_p11), %s2427_s17, 8192, %s2433_s22, %s2435_s25, %s2317_s11, %s2317_s11, %s2318_s21  }
  0x3e   : > { %p2764_p1 = scmp.ne.s32.totalorder %s2759_s20, 0 }
  0x3f   : > { %s2459_s26 = sand.u32 (!%p2764_p1), 1, %s2303_s13   ;;  %p2765_p4 = scmp.ne.s32.totalorder (!%p2764_p1), %s2757_s18, 0 }
  0x40   : > { %172 = sbr.rel (%p2764_p1) target bundleno = 463 (0x1cf), region = 32  ;;  %s1548_s27 = sshll.u32 (!%p2764_p1), %s2459_s26, 9 }
  0x41   : > { %s175_s28 = scalar_lea.sflag (!%p2764_p1), [#allocation3], %s2459_s26  ;;  %s2463_s29 = scalar_lea.vmem (!%p2764_p1), [#allocation2], %s1548_s27 }
  0x45   : > { %2286 = dma.done.wait (%p2765_p4), %s175_s28, 8192  }
  0x46   : > { %2288 = vsyncadd (%p2765_p4), %s175_s28, 4294959104  ;;  %p2766_p6 = scmp.eq.s32.totalorder %s2364_s16, 0 }
  0x48   : > { %2290 = dma.done.wait (%p2766_p6), [#allocation6], 1600   ;;  %p2767_p8 = pmov %p2766_p6 }
  0x49   : > { %v2319_v0 = vmov 0   ;;  %v2080_v1 = vld [vmem:[#allocation5 + $0x38] sm:$0xff]   ;;  %v2081_v2 = vld [vmem:[#allocation5 + $0x30] sm:$0xff]   ;;  %v2082_v3 = vld [vmem:[#allocation5 + $0x28] sm:$0xff]   ;;  %vm667_vm0 = vcmask 556032   ;;  %vm764_vm1 = vcmask 1041408  }
  0x4a   : > { %2292 = vsyncadd (%p2767_p8), [#allocation6], 4294965696  ;;  %768 = vmatprep.subr.bf16.mxu0 %v2319_v0  ;;  %1990 = vmatprep.subr.bf16.mxu1 %v2319_v0  ;;  %v2083_v4 = vld [vmem:[#allocation5 + $0x20] sm:$0xff]   ;;  %v2084_v6 = vld [vmem:[#allocation5 + $0x18] sm:$0xff]   ;;  %s1550_s17 = sshll.u32 %s2459_s26, 8  ;;  %s1798_s23 = sshll.u32 %s2364_s16, 12 }
  0x4b   : > { %769 = vmatpush1.bf16.msra.mxu0 %v2080_v1  ;;  %2003 = vmatpush1.bf16.msra.mxu1 %v2080_v1  ;;  %v2095_v5 = vld [vmem:[%s2463_s29 + $0x4] ss:$8 sps:$4 sm:$0xff]   ;;  %v2085_v8 = vld [vmem:[#allocation5 + $0x10] sm:$0xff]   ;;  %v2088_v11 = vld [vmem:[#allocation5 + $0x60] ss:$0 sps:$4 sm:$0x33]   ;;  %s2702_s7 = scalar_lea.hbm %s2752_s3, %s1798_s23 }
  0x4c   : > { %770 = vmatprep.subr.bf16.mxu0 %v2319_v0  ;;  %1991 = vmatprep.subr.bf16.mxu1 %v2319_v0  ;;  %v2098_v7 = vld [vmem:[%s2463_s29 + $0x104] ss:$8 sps:$4 sm:$0xff]   ;;  %v766_v12 = vsel %vm764_vm1, %v2088_v11, 0  ;;  %v2089_v13 = vld [vmem:[#allocation5 + $0x58] sm:$0xff]   ;;  %v2090_v14 = vld [vmem:[#allocation5 + $0x50] sm:$0xff]   ;;  %s2605_s22 = scalar_lea.vmem [#allocation7], %s1550_s17 }
  0x4d   : > { %1629 = vmatprep.mubr.msk.bf16.mxu0 %vm667_vm0, %v2095_v5  ;;  %1645 = vmatprep.mubr.msk.bf16.mxu1 %vm667_vm0, %v2098_v7  ;;  %v2086_v9 = vld [vmem:[#allocation5 + $0x8] sm:$0xff]   ;;  %v2087_v10 = vld [vmem:[#allocation5] sm:$0xff]   ;;  %v2099_v19 = vld [vmem:[%s2463_s29 + $0x14] ss:$8 sps:$4 sm:$0xff]   ;;  %s1456_s25 = sshll.u32 %s2605_s22, 4  ;;  %s1442_s16 = scalar_lea.sflag [#allocation4], %s2459_s26  ;;  %s2704_s25 = int_to_ptr.vmem [resolvable:$true] %s1456_s25 }
  0x4e   : > { %v2091_v15 = vld [vmem:[#allocation5 + $0x48] sm:$0xff]   ;;  %v2092_v16 = vld [vmem:[#allocation5 + $0x40] sm:$0xff]   ;;  %v2101_v20 = vld [vmem:[%s2463_s29 + $0x114] ss:$8 sps:$4 sm:$0xff]   ;;  %s2243_s8 = scalar_lea.vmem %s2704_s25, 4096  ;;  %p2768_p11 = scmp.ne.s32.totalorder %s2762_s6, 0 }
  0x4f   : > { %771 = vmatpush1.bf16.msra.mxu0 %v2081_v2  ;;  %2004 = vmatpush1.bf16.msra.mxu1 %v2081_v2  ;;  %v2093_v17 = vld [vmem:[%s2463_s29] ss:$8 sps:$4 sm:$0xff]   ;;  %v2103_v21 = vld [vmem:[%s2463_s29 + $0x10] ss:$8 sps:$4 sm:$0xff]   ;;  %v2105_v23 = vld [vmem:[%s2463_s29 + $0x24] ss:$8 sps:$4 sm:$0xff]   ;;  %p2244_p3 = scmp.ne.s32.totalorder %s2704_s25, %s2243_s8 }
  0x50   : > { %772 = vmatprep.subr.bf16.mxu0 %v2319_v0  ;;  %1992 = vmatprep.subr.bf16.mxu1 %v2319_v0  ;;  %v2096_v18 = vld [vmem:[%s2463_s29 + $0x100] ss:$8 sps:$4 sm:$0xff]   ;;  %v2104_v22 = vld [vmem:[%s2463_s29 + $0x110] ss:$8 sps:$4 sm:$0xff]   ;;  %v2107_v24 = vld [vmem:[%s2463_s29 + $0x124] ss:$8 sps:$4 sm:$0xff]  }
  0x51   : > { %v2109_v25 = vld [vmem:[%s2463_s29 + $0x20] ss:$8 sps:$4 sm:$0xff]   ;;  %v2111_v27 = vld [vmem:[%s2463_s29 + $0x34] ss:$8 sps:$4 sm:$0xff]   ;;  %v2115_v29 = vld [vmem:[%s2463_s29 + $0x30] ss:$8 sps:$4 sm:$0xff]   ;;  %p2245_p7 = pnand %p2244_p3, %p2768_p11 }
  0x52   : > { %v2110_v26 = vld [vmem:[%s2463_s29 + $0x120] ss:$8 sps:$4 sm:$0xff]   ;;  %v2113_v28 = vld [vmem:[%s2463_s29 + $0x134] ss:$8 sps:$4 sm:$0xff]   ;;  %v2116_v30 = vld [vmem:[%s2463_s29 + $0x130] ss:$8 sps:$4 sm:$0xff]  }
  0x53   : > { %773 = vmatpush1.bf16.msra.mxu0 %v2082_v3  ;;  %2005 = vmatpush1.bf16.msra.mxu1 %v2082_v3  ;;  %v2117_v31 = vld [vmem:[%s2463_s29 + $0x44] ss:$8 sps:$4 sm:$0xff]   ;;  %v2121_v33 = vld [vmem:[%s2463_s29 + $0x40] ss:$8 sps:$4 sm:$0xff]   ;;  %v2123_v35 = vld [vmem:[%s2463_s29 + $0x54] ss:$8 sps:$4 sm:$0xff]   ;;  %p2246_p12 = pneg %p2245_p7 }
  0x54   : > { %774 = vmatprep.subr.bf16.mxu0 %v2319_v0  ;;  %1993 = vmatprep.subr.bf16.mxu1 %v2319_v0  ;;  %v2119_v32 = vld [vmem:[%s2463_s29 + $0x144] ss:$8 sps:$4 sm:$0xff]   ;;  %v2122_v34 = vld [vmem:[%s2463_s29 + $0x140] ss:$8 sps:$4 sm:$0xff]   ;;  %v2125_v36 = vld [vmem:[%s2463_s29 + $0x154] ss:$8 sps:$4 sm:$0xff]  }
  0x55   : > { %v2127_v37 = vld [vmem:[%s2463_s29 + $0x50] ss:$8 sps:$4 sm:$0xff]   ;;  %v2129_v39 = vld [vmem:[%s2463_s29 + $0x64] ss:$8 sps:$4 sm:$0xff]   ;;  %v2133_v41 = vld [vmem:[%s2463_s29 + $0x60] ss:$8 sps:$4 sm:$0xff]  }
  0x56   : > { %v2128_v38 = vld [vmem:[%s2463_s29 + $0x150] ss:$8 sps:$4 sm:$0xff]   ;;  %v2131_v40 = vld [vmem:[%s2463_s29 + $0x164] ss:$8 sps:$4 sm:$0xff]   ;;  %v2134_v42 = vld [vmem:[%s2463_s29 + $0x160] ss:$8 sps:$4 sm:$0xff]  }
  0x57   : > { %775 = vmatpush1.bf16.msra.mxu0 %v2083_v4  ;;  %2006 = vmatpush1.bf16.msra.mxu1 %v2083_v4  ;;  %v2135_v43 = vld [vmem:[%s2463_s29 + $0x74] ss:$8 sps:$4 sm:$0xff]   ;;  %v2139_v45 = vld [vmem:[%s2463_s29 + $0x70] ss:$8 sps:$4 sm:$0xff]   ;;  %v2141_v47 = vld [vmem:[%s2463_s29 + $0x84] ss:$8 sps:$4 sm:$0xff]  }
  0x58   : > { %776 = vmatprep.subr.bf16.mxu0 %v2319_v0  ;;  %1994 = vmatprep.subr.bf16.mxu1 %v2319_v0  ;;  %v2137_v44 = vld [vmem:[%s2463_s29 + $0x174] ss:$8 sps:$4 sm:$0xff]   ;;  %v2140_v46 = vld [vmem:[%s2463_s29 + $0x170] ss:$8 sps:$4 sm:$0xff]   ;;  %v2143_v48 = vld [vmem:[%s2463_s29 + $0x184] ss:$8 sps:$4 sm:$0xff]  }
  0x59   : > { %v2145_v49 = vld [vmem:[%s2463_s29 + $0x80] ss:$8 sps:$4 sm:$0xff]   ;;  %v2147_v51 = vld [vmem:[%s2463_s29 + $0x94] ss:$8 sps:$4 sm:$0xff]   ;;  %v2151_v53 = vld [vmem:[%s2463_s29 + $0x90] ss:$8 sps:$4 sm:$0xff]  }
  0x5a   : > { %v2146_v50 = vld [vmem:[%s2463_s29 + $0x180] ss:$8 sps:$4 sm:$0xff]   ;;  %v2149_v52 = vld [vmem:[%s2463_s29 + $0x194] ss:$8 sps:$4 sm:$0xff]   ;;  %v2152_v54 = vld [vmem:[%s2463_s29 + $0x190] ss:$8 sps:$4 sm:$0xff]  }
  0x5b   : > { %777 = vmatpush1.bf16.msra.mxu0 %v2084_v6  ;;  %2007 = vmatpush1.bf16.msra.mxu1 %v2084_v6  ;;  %v2153_v55 = vld [vmem:[%s2463_s29 + $0xa4] ss:$8 sps:$4 sm:$0xff]   ;;  %v2157_v57 = vld [vmem:[%s2463_s29 + $0xa0] ss:$8 sps:$4 sm:$0xff]   ;;  %v2159_v59 = vld [vmem:[%s2463_s29 + $0xb4] ss:$8 sps:$4 sm:$0xff]  }
  0x5c   : > { %778 = vmatprep.subr.bf16.mxu0 %v2319_v0  ;;  %1995 = vmatprep.subr.bf16.mxu1 %v2319_v0  ;;  %v2155_v56 = vld [vmem:[%s2463_s29 + $0x1a4] ss:$8 sps:$4 sm:$0xff]   ;;  %v2158_v58 = vld [vmem:[%s2463_s29 + $0x1a0] ss:$8 sps:$4 sm:$0xff]   ;;  %v2161_v60 = vld [vmem:[%s2463_s29 + $0x1b4] ss:$8 sps:$4 sm:$0xff]  }
  0x5d   : > { %v2163_v61 = vld [vmem:[%s2463_s29 + $0xb0] ss:$8 sps:$4 sm:$0xff]   ;;  %v2165_v63 = vld [vmem:[%s2463_s29 + $0xc4] ss:$8 sps:$4 sm:$0xff]   ;;  %v2169_v1 = vld [vmem:[%s2463_s29 + $0xc0] ss:$8 sps:$4 sm:$0xff]  }
  0x5e   : > { %v2164_v62 = vld [vmem:[%s2463_s29 + $0x1b0] ss:$8 sps:$4 sm:$0xff]   ;;  %v2170_v2 = vld [vmem:[%s2463_s29 + $0x1c0] ss:$8 sps:$4 sm:$0xff]   ;;  %v2171_v3 = vld [vmem:[%s2463_s29 + $0xd4] ss:$8 sps:$4 sm:$0xff]  }
  0x5f   : > { %779 = vmatpush1.bf16.msra.mxu0 %v2085_v8  ;;  %2008 = vmatpush1.bf16.msra.mxu1 %v2085_v8  ;;  %v2173_v4 = vld [vmem:[%s2463_s29 + $0x1d4] ss:$8 sps:$4 sm:$0xff]   ;;  %v2175_v5 = vld [vmem:[%s2463_s29 + $0xd0] ss:$8 sps:$4 sm:$0xff]   ;;  %v2177_v7 = vld [vmem:[%s2463_s29 + $0xe4] ss:$8 sps:$4 sm:$0xff]  }
  0x60   : > { %780 = vmatprep.subr.bf16.mxu0 %v2319_v0  ;;  %1996 = vmatprep.subr.bf16.mxu1 %v2319_v0  ;;  %v2176_v6 = vld [vmem:[%s2463_s29 + $0x1d0] ss:$8 sps:$4 sm:$0xff]   ;;  %v2179_v8 = vld [vmem:[%s2463_s29 + $0x1e4] ss:$8 sps:$4 sm:$0xff]   ;;  %v2183_v11 = vld [vmem:[%s2463_s29 + $0xf4] ss:$8 sps:$4 sm:$0xff]  }
  0x61   : > { %s2320_s9 = smov [#allocation7]  }
  0x62   : > { %s2247_s10 = sshll.u32 %s2320_s9, 4  ;;  %s2248_s10 = int_to_ptr.vmem [resolvable:$false] %s2247_s10 }
  0x63   : > { %781 = vmatpush1.bf16.msra.mxu0 %v2086_v9  ;;  %2009 = vmatpush1.bf16.msra.mxu1 %v2086_v9  ;;  %v2181_v9 = vld [vmem:[%s2463_s29 + $0xe0] ss:$8 sps:$4 sm:$0xff]   ;;  %s2249_s11 = scalar_lea.vmem %s2248_s10, 8192  ;;  %p2250_p10 = scmp.lt.s32.totalorder %s2704_s25, %s2248_s10 }
  0x64   : > { %782 = vmatprep.subr.bf16.mxu0 %v2319_v0  ;;  %1997 = vmatprep.subr.bf16.mxu1 %v2319_v0  ;;  %p2251_p2 = scmp.lt.s32.totalorder %s2249_s11, %s2243_s8 }
  0x66   : > { %p2252_p13 = por %p2251_p2, %p2250_p10 }
  0x67   : > { %783 = vmatpush1.bf16.msra.mxu0 %v2087_v10  ;;  %2010 = vmatpush1.bf16.msra.mxu1 %v2087_v10  ;;  %v2182_v10 = vld [vmem:[%s2463_s29 + $0x1e0] ss:$8 sps:$4 sm:$0xff]  }
  0x68   : > { %790 = vmatprep.subr.bf16.mxu0 %v2319_v0  ;;  %1998 = vmatprep.subr.bf16.mxu1 %v2319_v0  ;;  %p2253_p0 = pnand %p2252_p13, %p2246_p12 }
  0x6b   : > { %791 = vmatpush2.bf16.msra.mxu0 %v766_v12  ;;  %2011 = vmatpush2.bf16.msra.mxu1 %v766_v12  ;;  %v2185_v12 = vld [vmem:[%s2463_s29 + $0x1f4] ss:$8 sps:$4 sm:$0xff]  }
  0x6c   : > { %792 = vmatprep.subr.bf16.mxu0 %v2319_v0  ;;  %1999 = vmatprep.subr.bf16.mxu1 %v2319_v0 }
  0x6f   : > { %793 = vmatpush2.bf16.msra.mxu0 %v2089_v13  ;;  %2012 = vmatpush2.bf16.msra.mxu1 %v2089_v13  ;;  %v2187_v13 = vld [vmem:[%s2463_s29 + $0xf0] ss:$8 sps:$4 sm:$0xff]  }
  0x70   : > { %794 = vmatprep.subr.bf16.mxu0 %v2319_v0  ;;  %2000 = vmatprep.subr.bf16.mxu1 %v2319_v0 }
  0x73   : > { %795 = vmatpush2.bf16.msra.mxu0 %v2090_v14  ;;  %2013 = vmatpush2.bf16.msra.mxu1 %v2090_v14  ;;  %v2188_v14 = vld [vmem:[%s2463_s29 + $0x1f0] ss:$8 sps:$4 sm:$0xff]  }
  0x74   : > { %796 = vmatprep.subr.bf16.mxu0 %v2319_v0  ;;  %2001 = vmatprep.subr.bf16.mxu1 %v2319_v0 }
  0x77   : > { %797 = vmatpush2.bf16.msra.mxu0 %v2091_v15  ;;  %2014 = vmatpush2.bf16.msra.mxu1 %v2091_v15  ;;  %v2598_v15 = vld [vmem:[%s2751_s2] ss:$0 sm:$0xff] }
  0x78   : > { %798 = vmatprep.subr.bf16.mxu0 %v2319_v0  ;;  %2002 = vmatprep.subr.bf16.mxu1 %v2319_v0  ;;  %v2167_v0 = vld [vmem:[%s2463_s29 + $0x1c4] ss:$8 sps:$4 sm:$0xff]  }
  0x7b   : > { %799 = vmatpush2.bf16.msra.mxu0 %v2092_v16  ;;  %2015 = vmatpush2.bf16.msra.mxu1 %v2092_v16 }
  0x7e   : > { %801 = vmatmul.mubr.bf16.vlgmr.msra.gmra.mxu0 %v2093_v17  ;;  %929 = vmatmul.mubr.bf16.vlgmr.msra.gmra.mxu1 %v2096_v18 }
  0x7f   : > { %1630 = vmatprep.mubr.msk.bf16.mxu0 %vm667_vm0, %v2099_v19  ;;  %1646 = vmatprep.mubr.msk.bf16.mxu1 %vm667_vm0, %v2101_v20 }
  0x86   : > { %809 = vmatmul.mubr.bf16.gmra.mxu0 %v2103_v21  ;;  %937 = vmatmul.mubr.bf16.gmra.mxu1 %v2104_v22 }
  0x87   : > { %1631 = vmatprep.mubr.msk.bf16.mxu0 %vm667_vm0, %v2105_v23  ;;  %1647 = vmatprep.mubr.msk.bf16.mxu1 %vm667_vm0, %v2107_v24 }
  0x8e   : > { %817 = vmatmul.mubr.bf16.gmra.mxu0 %v2109_v25  ;;  %945 = vmatmul.mubr.bf16.gmra.mxu1 %v2110_v26 }
  0x8f   : > { %1632 = vmatprep.mubr.msk.bf16.mxu0 %vm667_vm0, %v2111_v27  ;;  %1648 = vmatprep.mubr.msk.bf16.mxu1 %vm667_vm0, %v2113_v28 }
  0x96   : > { %825 = vmatmul.mubr.bf16.gmra.mxu0 %v2115_v29  ;;  %953 = vmatmul.mubr.bf16.gmra.mxu1 %v2116_v30 }
  0x97   : > { %1633 = vmatprep.mubr.msk.bf16.mxu0 %vm667_vm0, %v2117_v31  ;;  %1649 = vmatprep.mubr.msk.bf16.mxu1 %vm667_vm0, %v2119_v32 }
  0x9e   : > { %833 = vmatmul.mubr.bf16.gmra.mxu0 %v2121_v33  ;;  %961 = vmatmul.mubr.bf16.gmra.mxu1 %v2122_v34 }
  0x9f   : > { %1634 = vmatprep.mubr.msk.bf16.mxu0 %vm667_vm0, %v2123_v35  ;;  %1650 = vmatprep.mubr.msk.bf16.mxu1 %vm667_vm0, %v2125_v36 }
  0xa6   : > { %841 = vmatmul.mubr.bf16.gmra.mxu0 %v2127_v37  ;;  %969 = vmatmul.mubr.bf16.gmra.mxu1 %v2128_v38 }
  0xa7   : > { %1635 = vmatprep.mubr.msk.bf16.mxu0 %vm667_vm0, %v2129_v39  ;;  %1651 = vmatprep.mubr.msk.bf16.mxu1 %vm667_vm0, %v2131_v40 }
  0xae   : > { %849 = vmatmul.mubr.bf16.gmra.mxu0 %v2133_v41  ;;  %977 = vmatmul.mubr.bf16.gmra.mxu1 %v2134_v42 }
  0xaf   : > { %1636 = vmatprep.mubr.msk.bf16.mxu0 %vm667_vm0, %v2135_v43  ;;  %1652 = vmatprep.mubr.msk.bf16.mxu1 %vm667_vm0, %v2137_v44 }
  0xb6   : > { %857 = vmatmul.mubr.bf16.gmra.mxu0 %v2139_v45  ;;  %985 = vmatmul.mubr.bf16.gmra.mxu1 %v2140_v46 }
  0xb7   : > { %1637 = vmatprep.mubr.msk.bf16.mxu0 %vm667_vm0, %v2141_v47  ;;  %1653 = vmatprep.mubr.msk.bf16.mxu1 %vm667_vm0, %v2143_v48 }
  0xbe   : > { %865 = vmatmul.mubr.bf16.gmra.mxu0 %v2145_v49  ;;  %993 = vmatmul.mubr.bf16.gmra.mxu1 %v2146_v50 }
  0xbf   : > { %1638 = vmatprep.mubr.msk.bf16.mxu0 %vm667_vm0, %v2147_v51  ;;  %1654 = vmatprep.mubr.msk.bf16.mxu1 %vm667_vm0, %v2149_v52 }
  0xc6   : > { %873 = vmatmul.mubr.bf16.gmra.mxu0 %v2151_v53  ;;  %1001 = vmatmul.mubr.bf16.gmra.mxu1 %v2152_v54 }
  0xc7   : > { %1639 = vmatprep.mubr.msk.bf16.mxu0 %vm667_vm0, %v2153_v55  ;;  %1655 = vmatprep.mubr.msk.bf16.mxu1 %vm667_vm0, %v2155_v56 }
  0xce   : > { %881 = vmatmul.mubr.bf16.gmra.mxu0 %v2157_v57  ;;  %1009 = vmatmul.mubr.bf16.gmra.mxu1 %v2158_v58 }
  0xcf   : > { %1640 = vmatprep.mubr.msk.bf16.mxu0 %vm667_vm0, %v2159_v59  ;;  %1656 = vmatprep.mubr.msk.bf16.mxu1 %vm667_vm0, %v2161_v60 }
  0xd6   : > { %889 = vmatmul.mubr.bf16.gmra.mxu0 %v2163_v61  ;;  %1017 = vmatmul.mubr.bf16.gmra.mxu1 %v2164_v62 }
  0xd7   : > { %1641 = vmatprep.mubr.msk.bf16.mxu0 %vm667_vm0, %v2165_v63  ;;  %1657 = vmatprep.mubr.msk.bf16.mxu1 %vm667_vm0, %v2167_v0 }
  0xde   : > { %897 = vmatmul.mubr.bf16.gmra.mxu0 %v2169_v1  ;;  %1025 = vmatmul.mubr.bf16.gmra.mxu1 %v2170_v2 }
  0xdf   : > { %1642 = vmatprep.mubr.msk.bf16.mxu0 %vm667_vm0, %v2171_v3  ;;  %1658 = vmatprep.mubr.msk.bf16.mxu1 %vm667_vm0, %v2173_v4 }
  0xe6   : > { %905 = vmatmul.mubr.bf16.gmra.mxu0 %v2175_v5  ;;  %1033 = vmatmul.mubr.bf16.gmra.mxu1 %v2176_v6 }
  0xe7   : > { %1643 = vmatprep.mubr.msk.bf16.mxu0 %vm667_vm0, %v2177_v7  ;;  %1659 = vmatprep.mubr.msk.bf16.mxu1 %vm667_vm0, %v2179_v8 }
  0xee   : > { %913 = vmatmul.mubr.bf16.gmra.mxu0 %v2181_v9  ;;  %1041 = vmatmul.mubr.bf16.gmra.mxu1 %v2182_v10 }
  0xef   : > { %1644 = vmatprep.mubr.msk.bf16.mxu0 %vm667_vm0, %v2183_v11  ;;  %1660 = vmatprep.mubr.msk.bf16.mxu1 %vm667_vm0, %v2185_v12 }
  0xf6   : > { %921 = vmatmul.mubr.bf16.gmra.mxu0 %v2187_v13  ;;  %1049 = vmatmul.mubr.bf16.gmra.mxu1 %v2188_v14 }
 0x13e   : > { %v802_v16 = vpop.f32.mrf.mxu0  ;;  %v930_v17 = vpop.f32.mrf.mxu1 }
 0x13f   : > { %v803_v20 = vadd.f32 %v2598_v15, %v802_v16  ;;  %v931_v21 = vadd.f32 %v2598_v15, %v930_v17 }
 0x140   : > { %v804_v18 = vpop.f32.mrf.mxu0  ;;  %v932_v19 = vpop.f32.mrf.mxu1 }
 0x141   : > { %v1057_v28 = vmax.f32 %v803_v20, 0.0  ;;  %v1089_v29 = vmax.f32 %v931_v21, 0.0 }
 0x142   : > { %v805_v22 = vpop.f32.mrf.mxu0  ;;  %v933_v23 = vpop.f32.mrf.mxu1 }
 0x143   : > { %v806_v24 = vadd.f32 %v2598_v15, %v805_v22  ;;  %v934_v25 = vadd.f32 %v2598_v15, %v933_v23 }
 0x144   : > { %v807_v26 = vpop.f32.mrf.mxu0  ;;  %v935_v27 = vpop.f32.mrf.mxu1 }
 0x145   : > { %v1058_v30 = vmax.f32 %v806_v24, 0.0  ;;  %v1090_v31 = vmax.f32 %v934_v25, 0.0 }
 0x146   : > { %v810_v32 = vpop.f32.mrf.mxu0  ;;  %v938_v33 = vpop.f32.mrf.mxu1 }
 0x147   : > { %v1802_v34 = vpack.c.bf16 %v1058_v30, %v1057_v28  ;;  %v1882_v35 = vpack.c.bf16 %v1090_v31, %v1089_v29  ;;  %v811_v38 = vadd.f32 %v2598_v15, %v810_v32  ;;  %v939_v39 = vadd.f32 %v2598_v15, %v938_v33 }
 0x148   : > { %v812_v36 = vpop.f32.mrf.mxu0  ;;  %v940_v37 = vpop.f32.mrf.mxu1 }
 0x149   : > { %1803 = vst [vmem:[%s2605_s22] sm:$0xff] %v1802_v34   ;;  %1974 = vst [vmem:[%s2605_s22 + $0x80] sm:$0xff] %v1882_v35   ;;  %v1059_v46 = vmax.f32 %v811_v38, 0.0  ;;  %v1091_v47 = vmax.f32 %v939_v39, 0.0 }
 0x14a   : > { %v813_v40 = vpop.f32.mrf.mxu0  ;;  %v941_v41 = vpop.f32.mrf.mxu1 }
 0x14b   : > { %v814_v42 = vadd.f32 %v2598_v15, %v813_v40  ;;  %v942_v43 = vadd.f32 %v2598_v15, %v941_v41 }
 0x14c   : > { %v815_v44 = vpop.f32.mrf.mxu0  ;;  %v943_v45 = vpop.f32.mrf.mxu1 }
 0x14d   : > { %v1060_v48 = vmax.f32 %v814_v42, 0.0  ;;  %v1092_v49 = vmax.f32 %v942_v43, 0.0 }
 0x14e   : > { %v818_v50 = vpop.f32.mrf.mxu0  ;;  %v946_v51 = vpop.f32.mrf.mxu1 }
 0x14f   : > { %v1807_v52 = vpack.c.bf16 %v1060_v48, %v1059_v46  ;;  %v1887_v53 = vpack.c.bf16 %v1092_v49, %v1091_v47  ;;  %v819_v56 = vadd.f32 %v2598_v15, %v818_v50  ;;  %v947_v57 = vadd.f32 %v2598_v15, %v946_v51 }
 0x150   : > { %v820_v54 = vpop.f32.mrf.mxu0  ;;  %v948_v55 = vpop.f32.mrf.mxu1 }
 0x151   : > { %1959 = vst [vmem:[%s2605_s22 + $0x8] sm:$0xff] %v1807_v52   ;;  %1975 = vst [vmem:[%s2605_s22 + $0x88] sm:$0xff] %v1887_v53   ;;  %v1061_v0 = vmax.f32 %v819_v56, 0.0  ;;  %v1093_v1 = vmax.f32 %v947_v57, 0.0 }
 0x152   : > { %v821_v58 = vpop.f32.mrf.mxu0  ;;  %v949_v59 = vpop.f32.mrf.mxu1 }
 0x153   : > { %v822_v60 = vadd.f32 %v2598_v15, %v821_v58  ;;  %v950_v61 = vadd.f32 %v2598_v15, %v949_v59 }
 0x154   : > { %v823_v62 = vpop.f32.mrf.mxu0  ;;  %v951_v63 = vpop.f32.mrf.mxu1 }
 0x155   : > { %v1062_v2 = vmax.f32 %v822_v60, 0.0  ;;  %v1094_v3 = vmax.f32 %v950_v61, 0.0 }
 0x156   : > { %v826_v4 = vpop.f32.mrf.mxu0  ;;  %v954_v5 = vpop.f32.mrf.mxu1 }
 0x157   : > { %v1812_v6 = vpack.c.bf16 %v1062_v2, %v1061_v0  ;;  %v1892_v7 = vpack.c.bf16 %v1094_v3, %v1093_v1  ;;  %v827_v10 = vadd.f32 %v2598_v15, %v826_v4  ;;  %v955_v11 = vadd.f32 %v2598_v15, %v954_v5 }
 0x158   : > { %v828_v8 = vpop.f32.mrf.mxu0  ;;  %v956_v9 = vpop.f32.mrf.mxu1 }
 0x159   : > { %1960 = vst [vmem:[%s2605_s22 + $0x10] sm:$0xff] %v1812_v6   ;;  %1976 = vst [vmem:[%s2605_s22 + $0x90] sm:$0xff] %v1892_v7   ;;  %v1063_v19 = vmax.f32 %v827_v10, 0.0  ;;  %v1095_v20 = vmax.f32 %v955_v11, 0.0 }
 0x15a   : > { %v829_v12 = vpop.f32.mrf.mxu0  ;;  %v957_v13 = vpop.f32.mrf.mxu1 }
 0x15b   : > { %v830_v14 = vadd.f32 %v2598_v15, %v829_v12  ;;  %v958_v16 = vadd.f32 %v2598_v15, %v957_v13 }
 0x15c   : > { %v831_v17 = vpop.f32.mrf.mxu0  ;;  %v959_v18 = vpop.f32.mrf.mxu1 }
 0x15d   : > { %v1064_v21 = vmax.f32 %v830_v14, 0.0  ;;  %v1096_v22 = vmax.f32 %v958_v16, 0.0 }
 0x15e   : > { %v834_v23 = vpop.f32.mrf.mxu0  ;;  %v962_v24 = vpop.f32.mrf.mxu1 }
 0x15f   : > { %v1817_v25 = vpack.c.bf16 %v1064_v21, %v1063_v19  ;;  %v1897_v26 = vpack.c.bf16 %v1096_v22, %v1095_v20  ;;  %v835_v29 = vadd.f32 %v2598_v15, %v834_v23  ;;  %v963_v30 = vadd.f32 %v2598_v15, %v962_v24 }
 0x160   : > { %v836_v27 = vpop.f32.mrf.mxu0  ;;  %v964_v28 = vpop.f32.mrf.mxu1 }
 0x161   : > { %1961 = vst [vmem:[%s2605_s22 + $0x18] sm:$0xff] %v1817_v25   ;;  %1977 = vst [vmem:[%s2605_s22 + $0x98] sm:$0xff] %v1897_v26   ;;  %v1065_v37 = vmax.f32 %v835_v29, 0.0  ;;  %v1097_v38 = vmax.f32 %v963_v30, 0.0 }
 0x162   : > { %v837_v31 = vpop.f32.mrf.mxu0  ;;  %v965_v32 = vpop.f32.mrf.mxu1 }
 0x163   : > { %v838_v33 = vadd.f32 %v2598_v15, %v837_v31  ;;  %v966_v34 = vadd.f32 %v2598_v15, %v965_v32 }
 0x164   : > { %v839_v35 = vpop.f32.mrf.mxu0  ;;  %v967_v36 = vpop.f32.mrf.mxu1 }
 0x165   : > { %v1066_v39 = vmax.f32 %v838_v33, 0.0  ;;  %v1098_v40 = vmax.f32 %v966_v34, 0.0 }
 0x166   : > { %v842_v41 = vpop.f32.mrf.mxu0  ;;  %v970_v42 = vpop.f32.mrf.mxu1 }
 0x167   : > { %v1822_v43 = vpack.c.bf16 %v1066_v39, %v1065_v37  ;;  %v1902_v44 = vpack.c.bf16 %v1098_v40, %v1097_v38  ;;  %v843_v47 = vadd.f32 %v2598_v15, %v842_v41  ;;  %v971_v48 = vadd.f32 %v2598_v15, %v970_v42 }
 0x168   : > { %v844_v45 = vpop.f32.mrf.mxu0  ;;  %v972_v46 = vpop.f32.mrf.mxu1 }
 0x169   : > { %1962 = vst [vmem:[%s2605_s22 + $0x20] sm:$0xff] %v1822_v43   ;;  %1978 = vst [vmem:[%s2605_s22 + $0xa0] sm:$0xff] %v1902_v44   ;;  %v1067_v55 = vmax.f32 %v843_v47, 0.0  ;;  %v1099_v56 = vmax.f32 %v971_v48, 0.0 }
 0x16a   : > { %v845_v49 = vpop.f32.mrf.mxu0  ;;  %v973_v50 = vpop.f32.mrf.mxu1 }
 0x16b   : > { %v846_v51 = vadd.f32 %v2598_v15, %v845_v49  ;;  %v974_v52 = vadd.f32 %v2598_v15, %v973_v50 }
 0x16c   : > { %v847_v53 = vpop.f32.mrf.mxu0  ;;  %v975_v54 = vpop.f32.mrf.mxu1 }
 0x16d   : > { %v1068_v57 = vmax.f32 %v846_v51, 0.0  ;;  %v1100_v58 = vmax.f32 %v974_v52, 0.0 }
 0x16e   : > { %v850_v59 = vpop.f32.mrf.mxu0  ;;  %v978_v60 = vpop.f32.mrf.mxu1 }
 0x16f   : > { %v1827_v61 = vpack.c.bf16 %v1068_v57, %v1067_v55  ;;  %v1907_v62 = vpack.c.bf16 %v1100_v58, %v1099_v56  ;;  %v851_v1 = vadd.f32 %v2598_v15, %v850_v59  ;;  %v979_v2 = vadd.f32 %v2598_v15, %v978_v60 }
 0x170   : > { %v852_v63 = vpop.f32.mrf.mxu0  ;;  %v980_v0 = vpop.f32.mrf.mxu1 }
 0x171   : > { %1963 = vst [vmem:[%s2605_s22 + $0x28] sm:$0xff] %v1827_v61   ;;  %1979 = vst [vmem:[%s2605_s22 + $0xa8] sm:$0xff] %v1907_v62   ;;  %v1069_v9 = vmax.f32 %v851_v1, 0.0  ;;  %v1101_v10 = vmax.f32 %v979_v2, 0.0 }
 0x172   : > { %v853_v3 = vpop.f32.mrf.mxu0  ;;  %v981_v4 = vpop.f32.mrf.mxu1 }
 0x173   : > { %v854_v5 = vadd.f32 %v2598_v15, %v853_v3  ;;  %v982_v6 = vadd.f32 %v2598_v15, %v981_v4 }
 0x174   : > { %v855_v7 = vpop.f32.mrf.mxu0  ;;  %v983_v8 = vpop.f32.mrf.mxu1 }
 0x175   : > { %v1070_v11 = vmax.f32 %v854_v5, 0.0  ;;  %v1102_v12 = vmax.f32 %v982_v6, 0.0 }
 0x176   : > { %v858_v13 = vpop.f32.mrf.mxu0  ;;  %v986_v14 = vpop.f32.mrf.mxu1 }
 0x177   : > { %v1832_v16 = vpack.c.bf16 %v1070_v11, %v1069_v9  ;;  %v1912_v17 = vpack.c.bf16 %v1102_v12, %v1101_v10  ;;  %v859_v20 = vadd.f32 %v2598_v15, %v858_v13  ;;  %v987_v21 = vadd.f32 %v2598_v15, %v986_v14 }
 0x178   : > { %v860_v18 = vpop.f32.mrf.mxu0  ;;  %v988_v19 = vpop.f32.mrf.mxu1 }
 0x179   : > { %1964 = vst [vmem:[%s2605_s22 + $0x30] sm:$0xff] %v1832_v16   ;;  %1980 = vst [vmem:[%s2605_s22 + $0xb0] sm:$0xff] %v1912_v17   ;;  %v1071_v28 = vmax.f32 %v859_v20, 0.0  ;;  %v1103_v29 = vmax.f32 %v987_v21, 0.0 }
 0x17a   : > { %v861_v22 = vpop.f32.mrf.mxu0  ;;  %v989_v23 = vpop.f32.mrf.mxu1 }
 0x17b   : > { %v862_v24 = vadd.f32 %v2598_v15, %v861_v22  ;;  %v990_v25 = vadd.f32 %v2598_v15, %v989_v23 }
 0x17c   : > { %v863_v26 = vpop.f32.mrf.mxu0  ;;  %v991_v27 = vpop.f32.mrf.mxu1 }
 0x17d   : > { %v1072_v30 = vmax.f32 %v862_v24, 0.0  ;;  %v1104_v31 = vmax.f32 %v990_v25, 0.0 }
 0x17e   : > { %v866_v32 = vpop.f32.mrf.mxu0  ;;  %v994_v33 = vpop.f32.mrf.mxu1 }
 0x17f   : > { %v1837_v34 = vpack.c.bf16 %v1072_v30, %v1071_v28  ;;  %v1917_v35 = vpack.c.bf16 %v1104_v31, %v1103_v29  ;;  %v867_v38 = vadd.f32 %v2598_v15, %v866_v32  ;;  %v995_v39 = vadd.f32 %v2598_v15, %v994_v33 }
 0x180   : > { %v868_v36 = vpop.f32.mrf.mxu0  ;;  %v996_v37 = vpop.f32.mrf.mxu1 }
 0x181   : > { %1965 = vst [vmem:[%s2605_s22 + $0x38] sm:$0xff] %v1837_v34   ;;  %1981 = vst [vmem:[%s2605_s22 + $0xb8] sm:$0xff] %v1917_v35   ;;  %v1073_v46 = vmax.f32 %v867_v38, 0.0  ;;  %v1105_v47 = vmax.f32 %v995_v39, 0.0 }
 0x182   : > { %v869_v40 = vpop.f32.mrf.mxu0  ;;  %v997_v41 = vpop.f32.mrf.mxu1 }
 0x183   : > { %v870_v42 = vadd.f32 %v2598_v15, %v869_v40  ;;  %v998_v43 = vadd.f32 %v2598_v15, %v997_v41 }
 0x184   : > { %v871_v44 = vpop.f32.mrf.mxu0  ;;  %v999_v45 = vpop.f32.mrf.mxu1 }
 0x185   : > { %v1074_v48 = vmax.f32 %v870_v42, 0.0  ;;  %v1106_v49 = vmax.f32 %v998_v43, 0.0 }
 0x186   : > { %v874_v50 = vpop.f32.mrf.mxu0  ;;  %v1002_v51 = vpop.f32.mrf.mxu1 }
 0x187   : > { %v1842_v52 = vpack.c.bf16 %v1074_v48, %v1073_v46  ;;  %v1922_v53 = vpack.c.bf16 %v1106_v49, %v1105_v47  ;;  %v875_v56 = vadd.f32 %v2598_v15, %v874_v50  ;;  %v1003_v57 = vadd.f32 %v2598_v15, %v1002_v51 }
 0x188   : > { %v876_v54 = vpop.f32.mrf.mxu0  ;;  %v1004_v55 = vpop.f32.mrf.mxu1 }
 0x189   : > { %1966 = vst [vmem:[%s2605_s22 + $0x40] sm:$0xff] %v1842_v52   ;;  %1982 = vst [vmem:[%s2605_s22 + $0xc0] sm:$0xff] %v1922_v53   ;;  %v1075_v0 = vmax.f32 %v875_v56, 0.0  ;;  %v1107_v1 = vmax.f32 %v1003_v57, 0.0 }
 0x18a   : > { %v877_v58 = vpop.f32.mrf.mxu0  ;;  %v1005_v59 = vpop.f32.mrf.mxu1 }
 0x18b   : > { %v878_v60 = vadd.f32 %v2598_v15, %v877_v58  ;;  %v1006_v61 = vadd.f32 %v2598_v15, %v1005_v59 }
 0x18c   : > { %v879_v62 = vpop.f32.mrf.mxu0  ;;  %v1007_v63 = vpop.f32.mrf.mxu1 }
 0x18d   : > { %v1076_v2 = vmax.f32 %v878_v60, 0.0  ;;  %v1108_v3 = vmax.f32 %v1006_v61, 0.0 }
 0x18e   : > { %v882_v4 = vpop.f32.mrf.mxu0  ;;  %v1010_v5 = vpop.f32.mrf.mxu1 }
 0x18f   : > { %v1847_v6 = vpack.c.bf16 %v1076_v2, %v1075_v0  ;;  %v1927_v7 = vpack.c.bf16 %v1108_v3, %v1107_v1  ;;  %v883_v10 = vadd.f32 %v2598_v15, %v882_v4  ;;  %v1011_v11 = vadd.f32 %v2598_v15, %v1010_v5 }
 0x190   : > { %v884_v8 = vpop.f32.mrf.mxu0  ;;  %v1012_v9 = vpop.f32.mrf.mxu1 }
 0x191   : > { %1967 = vst [vmem:[%s2605_s22 + $0x48] sm:$0xff] %v1847_v6   ;;  %1983 = vst [vmem:[%s2605_s22 + $0xc8] sm:$0xff] %v1927_v7   ;;  %v1077_v19 = vmax.f32 %v883_v10, 0.0  ;;  %v1109_v20 = vmax.f32 %v1011_v11, 0.0 }
 0x192   : > { %v885_v12 = vpop.f32.mrf.mxu0  ;;  %v1013_v13 = vpop.f32.mrf.mxu1 }
 0x193   : > { %v886_v14 = vadd.f32 %v2598_v15, %v885_v12  ;;  %v1014_v16 = vadd.f32 %v2598_v15, %v1013_v13 }
 0x194   : > { %v887_v17 = vpop.f32.mrf.mxu0  ;;  %v1015_v18 = vpop.f32.mrf.mxu1 }
 0x195   : > { %v1078_v21 = vmax.f32 %v886_v14, 0.0  ;;  %v1110_v22 = vmax.f32 %v1014_v16, 0.0 }
 0x196   : > { %v890_v23 = vpop.f32.mrf.mxu0  ;;  %v1018_v24 = vpop.f32.mrf.mxu1 }
 0x197   : > { %v1852_v25 = vpack.c.bf16 %v1078_v21, %v1077_v19  ;;  %v1932_v26 = vpack.c.bf16 %v1110_v22, %v1109_v20  ;;  %v891_v29 = vadd.f32 %v2598_v15, %v890_v23  ;;  %v1019_v30 = vadd.f32 %v2598_v15, %v1018_v24 }
 0x198   : > { %v892_v27 = vpop.f32.mrf.mxu0  ;;  %v1020_v28 = vpop.f32.mrf.mxu1 }
 0x199   : > { %1968 = vst [vmem:[%s2605_s22 + $0x50] sm:$0xff] %v1852_v25   ;;  %1984 = vst [vmem:[%s2605_s22 + $0xd0] sm:$0xff] %v1932_v26   ;;  %v1079_v37 = vmax.f32 %v891_v29, 0.0  ;;  %v1111_v38 = vmax.f32 %v1019_v30, 0.0 }
 0x19a   : > { %v893_v31 = vpop.f32.mrf.mxu0  ;;  %v1021_v32 = vpop.f32.mrf.mxu1 }
 0x19b   : > { %v894_v33 = vadd.f32 %v2598_v15, %v893_v31  ;;  %v1022_v34 = vadd.f32 %v2598_v15, %v1021_v32 }
 0x19c   : > { %v895_v35 = vpop.f32.mrf.mxu0  ;;  %v1023_v36 = vpop.f32.mrf.mxu1 }
 0x19d   : > { %v1080_v39 = vmax.f32 %v894_v33, 0.0  ;;  %v1112_v40 = vmax.f32 %v1022_v34, 0.0 }
 0x19e   : > { %v898_v41 = vpop.f32.mrf.mxu0  ;;  %v1026_v42 = vpop.f32.mrf.mxu1 }
 0x19f   : > { %v1857_v43 = vpack.c.bf16 %v1080_v39, %v1079_v37  ;;  %v1937_v44 = vpack.c.bf16 %v1112_v40, %v1111_v38  ;;  %v899_v47 = vadd.f32 %v2598_v15, %v898_v41  ;;  %v1027_v48 = vadd.f32 %v2598_v15, %v1026_v42 }
 0x1a0   : > { %v900_v45 = vpop.f32.mrf.mxu0  ;;  %v1028_v46 = vpop.f32.mrf.mxu1 }
 0x1a1   : > { %1969 = vst [vmem:[%s2605_s22 + $0x58] sm:$0xff] %v1857_v43   ;;  %1985 = vst [vmem:[%s2605_s22 + $0xd8] sm:$0xff] %v1937_v44   ;;  %v1081_v55 = vmax.f32 %v899_v47, 0.0  ;;  %v1113_v56 = vmax.f32 %v1027_v48, 0.0 }
 0x1a2   : > { %v901_v49 = vpop.f32.mrf.mxu0  ;;  %v1029_v50 = vpop.f32.mrf.mxu1 }
 0x1a3   : > { %v902_v51 = vadd.f32 %v2598_v15, %v901_v49  ;;  %v1030_v52 = vadd.f32 %v2598_v15, %v1029_v50 }
 0x1a4   : > { %v903_v53 = vpop.f32.mrf.mxu0  ;;  %v1031_v54 = vpop.f32.mrf.mxu1 }
 0x1a5   : > { %v1082_v57 = vmax.f32 %v902_v51, 0.0  ;;  %v1114_v58 = vmax.f32 %v1030_v52, 0.0 }
 0x1a6   : > { %v906_v59 = vpop.f32.mrf.mxu0  ;;  %v1034_v60 = vpop.f32.mrf.mxu1 }
 0x1a7   : > { %v1862_v61 = vpack.c.bf16 %v1082_v57, %v1081_v55  ;;  %v1942_v62 = vpack.c.bf16 %v1114_v58, %v1113_v56  ;;  %v907_v1 = vadd.f32 %v2598_v15, %v906_v59  ;;  %v1035_v2 = vadd.f32 %v2598_v15, %v1034_v60 }
 0x1a8   : > { %v908_v63 = vpop.f32.mrf.mxu0  ;;  %v1036_v0 = vpop.f32.mrf.mxu1 }
 0x1a9   : > { %1970 = vst [vmem:[%s2605_s22 + $0x60] sm:$0xff] %v1862_v61   ;;  %1986 = vst [vmem:[%s2605_s22 + $0xe0] sm:$0xff] %v1942_v62   ;;  %v1083_v9 = vmax.f32 %v907_v1, 0.0  ;;  %v1115_v10 = vmax.f32 %v1035_v2, 0.0 }
 0x1aa   : > { %v909_v3 = vpop.f32.mrf.mxu0  ;;  %v1037_v4 = vpop.f32.mrf.mxu1 }
 0x1ab   : > { %v910_v5 = vadd.f32 %v2598_v15, %v909_v3  ;;  %v1038_v6 = vadd.f32 %v2598_v15, %v1037_v4 }
 0x1ac   : > { %v911_v7 = vpop.f32.mrf.mxu0  ;;  %v1039_v8 = vpop.f32.mrf.mxu1 }
 0x1ad   : > { %v1084_v11 = vmax.f32 %v910_v5, 0.0  ;;  %v1116_v12 = vmax.f32 %v1038_v6, 0.0 }
 0x1ae   : > { %v914_v13 = vpop.f32.mrf.mxu0  ;;  %v1042_v14 = vpop.f32.mrf.mxu1 }
 0x1af   : > { %v1867_v16 = vpack.c.bf16 %v1084_v11, %v1083_v9  ;;  %v1947_v17 = vpack.c.bf16 %v1116_v12, %v1115_v10  ;;  %v915_v20 = vadd.f32 %v2598_v15, %v914_v13  ;;  %v1043_v21 = vadd.f32 %v2598_v15, %v1042_v14 }
 0x1b0   : > { %v916_v18 = vpop.f32.mrf.mxu0  ;;  %v1044_v19 = vpop.f32.mrf.mxu1 }
 0x1b1   : > { %1971 = vst [vmem:[%s2605_s22 + $0x68] sm:$0xff] %v1867_v16   ;;  %1987 = vst [vmem:[%s2605_s22 + $0xe8] sm:$0xff] %v1947_v17   ;;  %v1085_v28 = vmax.f32 %v915_v20, 0.0  ;;  %v1117_v29 = vmax.f32 %v1043_v21, 0.0 }
 0x1b2   : > { %v917_v22 = vpop.f32.mrf.mxu0  ;;  %v1045_v23 = vpop.f32.mrf.mxu1 }
 0x1b3   : > { %v918_v24 = vadd.f32 %v2598_v15, %v917_v22  ;;  %v1046_v25 = vadd.f32 %v2598_v15, %v1045_v23 }
 0x1b4   : > { %v919_v26 = vpop.f32.mrf.mxu0  ;;  %v1047_v27 = vpop.f32.mrf.mxu1 }
 0x1b5   : > { %v1086_v30 = vmax.f32 %v918_v24, 0.0  ;;  %v1118_v31 = vmax.f32 %v1046_v25, 0.0 }
 0x1b6   : > { %v922_v32 = vpop.f32.mrf.mxu0  ;;  %v1050_v33 = vpop.f32.mrf.mxu1 }
 0x1b7   : > { %v1872_v34 = vpack.c.bf16 %v1086_v30, %v1085_v28  ;;  %v1952_v35 = vpack.c.bf16 %v1118_v31, %v1117_v29  ;;  %v923_v38 = vadd.f32 %v2598_v15, %v922_v32  ;;  %v1051_v39 = vadd.f32 %v2598_v15, %v1050_v33 }
 0x1b8   : > { %v924_v36 = vpop.f32.mrf.mxu0  ;;  %v1052_v37 = vpop.f32.mrf.mxu1 }
 0x1b9   : > { %1972 = vst [vmem:[%s2605_s22 + $0x70] sm:$0xff] %v1872_v34   ;;  %1988 = vst [vmem:[%s2605_s22 + $0xf0] sm:$0xff] %v1952_v35   ;;  %v1087_v46 = vmax.f32 %v923_v38, 0.0  ;;  %v1119_v47 = vmax.f32 %v1051_v39, 0.0 }
 0x1ba   : > { %v925_v40 = vpop.f32.mrf.mxu0  ;;  %v1053_v41 = vpop.f32.mrf.mxu1 }
 0x1bb   : > { %v926_v42 = vadd.f32 %v2598_v15, %v925_v40  ;;  %v1054_v43 = vadd.f32 %v2598_v15, %v1053_v41 }
 0x1bc   : > { %v927_v44 = vpop.f32.mrf.mxu0  ;;  %v1055_v45 = vpop.f32.mrf.mxu1 }
 0x1bd   : > { %v1088_v48 = vmax.f32 %v926_v42, 0.0  ;;  %v1120_v49 = vmax.f32 %v1054_v43, 0.0 }
 0x1bf   : > { %v1877_v15 = vpack.c.bf16 %v1088_v48, %v1087_v46  ;;  %v1957_v50 = vpack.c.bf16 %v1120_v49, %v1119_v47 }
 0x1c1   : > { %1973 = vst [vmem:[%s2605_s22 + $0x78] sm:$0xff] %v1877_v15   ;;  %1989 = vst [vmem:[%s2605_s22 + $0xf8] sm:$0xff] %v1957_v50  }
 0x1c2   : > { %2256 = shalt.err (!%p2253_p0)
}
 0x1c3   : > { %s2257_s21 = scalar_lea.hbm %s2702_s7, 4096  ;;  %s2261_s29 = scalar_lea.hbm %s2752_s3, 8192 }
 0x1c4   : > { %p2258_p5 = scmp.ne.s32.totalorder %s2702_s7, %s2257_s21  ;;  %p2262_p4 = scmp.lt.s32.totalorder %s2702_s7, %s2752_s3 }
 0x1c5   : > { %p2263_p6 = scmp.lt.s32.totalorder %s2261_s29, %s2257_s21 }
 0x1c6   : > { %p2259_p9 = pnand %p2258_p5, %p2768_p11 }
 0x1c7   : > { %p2264_p8 = por %p2263_p6, %p2262_p4 }
 0x1c8   : > { %p2260_p1 = pneg %p2259_p9 }
 0x1ca   : > { %p2265_p3 = pnand %p2264_p8, %p2260_p1 }
 0x1cc   : > { %2268 = shalt.err (!%p2265_p3)
}
 0x1cd   : > { %s2321_s17 = smov 64   ;;  %s2322_s22 = smov 4  }
 0x1ce   : > { %2022 = dma.vmem_to_hbm [thread:$0]  (%p2768_p11), %s2704_s25, 4096, %s2702_s7, %s1442_s16, %s2321_s17, %s2321_s17, %s2322_s22  }
 0x1cf PF: > { %s1471_s23 = sand.u32 1, %s2299_s12   ;;  %p2769_p7 = scmp.ne.s32.totalorder %s2758_s19, 0 }
 0x1d0   : > { %p2770_p12 = scmp.ge.s32.totalorder %s2311_s15, 2  ;;  %s1472_s30 = scalar_lea.sflag [#allocation4], %s1471_s23 }
 0x1d2   : > { %p2033_p10 = pnand %p2770_p12, %p2769_p7 }
 0x1d4   : > { %p2034_p2 = pneg %p2033_p10 }
 0x1d6   : > { %2294 = dma.done.wait (%p2034_p2), %s1472_s30, 4096  }
 0x1d7   : > { %2296 = vsyncadd (%p2034_p2), %s1472_s30, 4294963200  ;;  %p17_p13 = scmp.ge.s32.totalorder %s2397_s24, 4   ;;  %s2771_s12 = smov %s2303_s13 }
 0x1d8   : > { %s2772_s13 = smov %s2307_s14  ;;  %s2773_s14 = smov %s2414_s5 }
 0x1d9   : > { %s2774_s15 = smov %s2397_s24  ;;  %19 = sbr.rel (!%p17_p13) target bundleno = 6 (0x6), region = 81 }
 0x1de   :  { %1477 = vsyncpa [#allocation3], 1 }
 0x1df   :  { %1479 = vsyncpa [#allocation3 + $0x1], 1 }
 0x1e0   :  { %1480 = vsyncpa [#allocation6], 1 }
 0x1e1   :  { %1481 = vsyncpa [#allocation4], 1 }
 0x1e2   :  { %1483 = vsyncpa [#allocation4 + $0x1], 1 }

</bundles_post_ra>
